<compile_context>
chip_gen: v5e
topology: v5e:2x2
jax: 0.10.0
libtpu: 0.0.40
codegen_flags: <defaults>
</compile_context>

<pallas_src>
import functools

import jax
import jax.numpy as jnp
from jax.experimental import pallas as pl
from jax.experimental.pallas import tpu as pltpu


def _cdiv(a, b):
    return -(-a // b)


def _round_up(v, m):
    return ((v + m - 1) // m) * m


def _tpu_info():
    try:
        return pltpu.get_tpu_info()
    except Exception:  # pragma: no cover - conservative fallback
        return None


def _vmem_capacity_bytes():
    info = _tpu_info()
    if info is not None:
        v = getattr(info, "vmem_capacity_bytes", None)
        if v:
            return int(v)
    return 64 << 20  # conservative default (v7x per-core VMEM)


def _num_tensorcores():
    info = _tpu_info()
    for name in ("num_cores", "tensorcore_count", "num_tensorcores", "cores_per_chip"):
        v = getattr(info, name, None) if info is not None else None
        if isinstance(v, int) and v > 0:
            return v
    try:
        v = getattr(jax.devices()[0], "num_cores", None)
        if isinstance(v, int) and v > 0:
            return v
    except Exception:  # pragma: no cover
        pass
    return 1


def _rmsnorm_kernel(x_ref, w_ref, o_ref, *, eps, inv_hidden, input_dtype):
    # x_ref: (block_rows, hidden) tile of the flattened input
    # w_ref: (1, hidden) weight in its original dtype
    # o_ref: (block_rows, hidden) output in promote(x.dtype, weight.dtype)
    #
    # Pass 1: sum-of-squares reduction. Only the (rows, 1) scale stays live
    # past this point (no persistent f32 widened tile).
    x32 = x_ref[...].astype(jnp.float32)
    var = jnp.sum(x32 * x32, axis=-1, keepdims=True) * inv_hidden  # .pow(2).mean(-1)
    scale = jax.lax.rsqrt(var + eps)                               # rsqrt(var + eps)
    # Pass 2: re-read the tile and normalize (recompute-cast is cheap VALU work
    # fully hidden under the HBM DMAs; avoids keeping a 4-8 B/elem temp alive).
    normed = x_ref[...].astype(jnp.float32) * scale
    # Exact HF/torch semantics: cast normalized value back to the input dtype,
    # THEN multiply by the weight in its own dtype.
    o_ref[...] = (w_ref[...] * normed.astype(input_dtype)).astype(o_ref.dtype)


def _choose_block_rows(n_rows, hidden, in_dtype, out_dtype, num_cores, vmem_bytes):
    """Row tile sized by bytes (not a fixed row cap), VMEM- and core-aware."""
    in_b = jnp.dtype(in_dtype).itemsize
    out_b = jnp.dtype(out_dtype).itemsize
    if in_b >= 4:
        align = 8          # f32: (8,128) vregs
    elif in_b == 2:
        align = 16         # bf16/f16 pack 16 sublanes per vreg
    else:
        align = 32         # int8/fp8 pack 32 sublanes per vreg

    rows_cap = _round_up(max(n_rows, 1), align)   # never exceed the array (+align)

    # VMEM budget: 2x input + 2x output double-buffered tiles + ~8 B/elem of
    # in-kernel f32 temporaries, against ~3/4 of physical VMEM (works within
    # v7x's 64 MiB as well as v5e/v6e's 128 MiB).
    budget = (vmem_bytes * 3) // 4
    per_row = hidden * (2 * in_b + 2 * out_b + 8)
    vmem_rows = max(align, (budget // max(per_row, 1)) // align * align)

    # Byte target: keep growing the tile until the input tile is ~8 MiB (well
    # past the 2-4 MiB knee where the ~0.35 us per-grid-step cost vanishes).
    target_tile_bytes = 8 << 20
    target_rows = _round_up(max(1, target_tile_bytes // max(hidden * in_b, 1)), align)

    block = max(align, min(rows_cap, vmem_rows, target_rows))

    # Shard evenly across TensorCores (v7x: 2 per chip). Only split when the
    # chip actually has multiple cores; 1-TC chips keep single-step grids.
    if num_cores > 1 and n_rows > align:
        steps = _cdiv(n_rows, block)
        steps = _round_up(max(steps, num_cores), num_cores)
        block = _round_up(_cdiv(n_rows, steps), align)
        block = max(align, min(block, rows_cap, vmem_rows))
    return int(block)


def rmsnorm(x, weight, eps=1e-6, *, block_rows=None):
    """RMSNorm over the last axis of `x` with per-feature `weight`."""
    orig_shape = x.shape
    hidden = orig_shape[-1]
    assert weight.shape == (hidden,)

    # torch: weight(dtype_w) * normed(input_dtype) -> promote of the two.
    out_dtype = jnp.promote_types(x.dtype, weight.dtype)

    x2d = x.reshape(-1, hidden)            # free (metadata) reshape
    n_rows = x2d.shape[0]
    w2d = weight.reshape(1, hidden)

    vmem_bytes = _vmem_capacity_bytes()
    num_cores = _num_tensorcores()
    if block_rows is None:
        block_rows = _choose_block_rows(
            n_rows, hidden, x.dtype, out_dtype, num_cores, vmem_bytes
        )

    grid = (_cdiv(n_rows, block_rows),)

    # Honest VMEM accounting: double-buffered IO tiles + weight + the f32
    # working set inside the kernel body; clamp to physical capacity.
    in_b = jnp.dtype(x.dtype).itemsize
    out_b = jnp.dtype(out_dtype).itemsize
    w_b = jnp.dtype(weight.dtype).itemsize
    io_bytes = block_rows * hidden * (2 * in_b + 2 * out_b) + 2 * hidden * w_b
    temp_bytes = block_rows * hidden * 8   # in-kernel f32 temporaries
    vmem_limit = int(min(vmem_bytes, max(16 << 20, io_bytes + temp_bytes + (4 << 20))))

    out = pl.pallas_call(
        functools.partial(
            _rmsnorm_kernel,
            eps=eps,
            inv_hidden=1.0 / float(hidden),
            input_dtype=x.dtype,
        ),
        out_shape=jax.ShapeDtypeStruct((n_rows, hidden), out_dtype),
        grid_spec=pltpu.PrefetchScalarGridSpec(
            num_scalar_prefetch=0,
            grid=grid,
            in_specs=[
                # hidden is the full array dim -> exempt from the 128-lane rule,
                # no wrapper-side padding needed. Ragged row edge blocks are
                # handled by Pallas (OOB reads feed only masked-out writes).
                pl.BlockSpec((block_rows, hidden), lambda i: (i, 0)),
                pl.BlockSpec((1, hidden), lambda i: (0, 0)),
            ],
            out_specs=pl.BlockSpec((block_rows, hidden), lambda i: (i, 0)),
        ),
        compiler_params=pltpu.CompilerParams(
            dimension_semantics=("parallel",),
            vmem_limit_bytes=vmem_limit,
        ),
    )(x2d, w2d)

    return out.reshape(orig_shape)


def rmsnorm_ref(x, weight, eps=1e-6):
    """Pure-JAX reference mirroring the PyTorch forward exactly."""
    xf = x.astype(jnp.float32)
    var = jnp.mean(xf * xf, axis=-1, keepdims=True)
    normed = xf * jax.lax.rsqrt(var + eps)
    return weight * normed.astype(x.dtype)


if __name__ == "__main__":
    key = jax.random.PRNGKey(0)
    batch, seq, hidden = 2, 8, 32

    x = jax.random.normal(key, (batch, seq, hidden), dtype=jnp.float32)
    # Module initializes weight to ones; perturb deterministically so the
    # scaling path is actually exercised.
    weight = jnp.ones((hidden,), dtype=jnp.float32) + 0.01 * jnp.arange(
        hidden, dtype=jnp.float32
    )

    # f32 case.
    out = jax.block_until_ready(rmsnorm(x, weight, eps=1e-6))
    ref = rmsnorm_ref(x, weight, eps=1e-6)
    assert out.shape == ref.shape, (out.shape, ref.shape)
    assert out.dtype == ref.dtype, (out.dtype, ref.dtype)
    assert jnp.allclose(out, ref, atol=1e-5, rtol=1e-5), float(
        jnp.max(jnp.abs(out - ref))
    )

    # bf16 case: weight in model dtype (HF style) -> bf16 output, no widening.
    x_bf = x.astype(jnp.bfloat16)
    w_bf = weight.astype(jnp.bfloat16)
    out_bf = jax.block_until_ready(rmsnorm(x_bf, w_bf, eps=1e-6))
    ref_bf = rmsnorm_ref(x_bf, w_bf, eps=1e-6)
    assert out_bf.dtype == jnp.bfloat16, out_bf.dtype
    assert jnp.allclose(
        out_bf.astype(jnp.float32), ref_bf.astype(jnp.float32), atol=2e-2, rtol=2e-2
    ), float(jnp.max(jnp.abs(out_bf.astype(jnp.float32) - ref_bf.astype(jnp.float32))))

    # Ragged-row case: n_rows (3*7=21) not a multiple of block_rows (8) ->
    # exercises the masked edge block (no wrapper pad/slice anywhere).
    x_ragged = jax.random.normal(jax.random.PRNGKey(0), (3, 7, hidden), jnp.float32)
    out_r = jax.block_until_ready(rmsnorm(x_ragged, weight, eps=1e-6, block_rows=8))
    ref_r = rmsnorm_ref(x_ragged, weight, eps=1e-6)
    assert out_r.shape == ref_r.shape, (out_r.shape, ref_r.shape)
    assert jnp.allclose(out_r, ref_r, atol=1e-5, rtol=1e-5), float(
        jnp.max(jnp.abs(out_r - ref_r))
    )

    print("KERNEL_OK")
</pallas_src>

<mosaic_0001>
module attributes {stable_mosaic.version = 11 : i64} {
  func.func @_rmsnorm_kernel(%arg0: i32, %arg1: memref<16x32xf32, #tpu.memory_space<vmem>>, %arg2: memref<1x32xf32, #tpu.memory_space<vmem>>, %arg3: memref<16x32xf32, #tpu.memory_space<vmem>>) attributes {dimension_semantics = [#tpu.dimension_semantics<parallel>], iteration_bounds = array<i64: 1>, scalar_prefetch = 0 : i64, scratch_operands = 0 : i64, tpu.core_type = #tpu.core_type<tc>, window_params = [{transform_indices = @transform_0, window_bounds = array<i64: 16, 32>}, {pipeline_mode = #tpu.pipeline_mode<synchronous>, transform_indices = @transform_1, window_bounds = array<i64: 1, 32>}, {transform_indices = @transform_2, window_bounds = array<i64: 16, 32>}]} {
    %c0 = arith.constant 0 : index
    %c0_0 = arith.constant 0 : index
    %0 = vector.load %arg1[%c0, %c0_0] : memref<16x32xf32, #tpu.memory_space<vmem>>, vector<16x32xf32>
    %1 = arith.mulf %0, %0 : vector<16x32xf32>
    %cst = arith.constant dense<0.000000e+00> : vector<16xf32>
    %2 = vector.multi_reduction <add>, %1, %cst [1] : vector<16x32xf32> to vector<16xf32>
    %3 = vector.shape_cast %2 : vector<16xf32> to vector<16x1xf32>
    %cst_1 = arith.constant 3.125000e-02 : f32
    %4 = vector.broadcast %cst_1 : f32 to vector<16x1xf32>
    %5 = arith.mulf %3, %4 : vector<16x1xf32>
    %cst_2 = arith.constant 9.99999997E-7 : f32
    %6 = vector.broadcast %cst_2 : f32 to vector<16x1xf32>
    %7 = arith.addf %5, %6 : vector<16x1xf32>
    %8 = math.rsqrt %7 : vector<16x1xf32>
    %c0_3 = arith.constant 0 : index
    %c0_4 = arith.constant 0 : index
    %9 = vector.load %arg1[%c0_3, %c0_4] : memref<16x32xf32, #tpu.memory_space<vmem>>, vector<16x32xf32>
    %10 = vector.broadcast %8 : vector<16x1xf32> to vector<16x32xf32>
    %11 = arith.mulf %9, %10 : vector<16x32xf32>
    %c0_5 = arith.constant 0 : index
    %c0_6 = arith.constant 0 : index
    %12 = vector.load %arg2[%c0_5, %c0_6] : memref<1x32xf32, #tpu.memory_space<vmem>>, vector<1x32xf32>
    %13 = vector.broadcast %12 : vector<1x32xf32> to vector<16x32xf32>
    %14 = arith.mulf %13, %11 : vector<16x32xf32>
    %c0_7 = arith.constant 0 : index
    %c0_8 = arith.constant 0 : index
    %15 = vector.load %arg3[%c0_7, %c0_8] : memref<16x32xf32, #tpu.memory_space<vmem>>, vector<16x32xf32>
    tpu.vector_store %arg3[%c0_7, %c0_8], %14 {strides = array<i32>} : memref<16x32xf32, #tpu.memory_space<vmem>>, vector<16x32xf32>,
    return
  }
  func.func @transform_0(%arg0: i32) -> (i32, i32) {
    %c0_i32 = arith.constant 0 : i32
    %c0_i32_0 = arith.constant 0 : i32
    return %arg0, %c0_i32 : i32, i32
  }
  func.func @transform_1(%arg0: i32) -> (i32, i32) {
    %c0_i32 = arith.constant 0 : i32
    %c0_i32_0 = arith.constant 0 : i32
    %c0_i32_1 = arith.constant 0 : i32
    return %c0_i32, %c0_i32_0 : i32, i32
  }
  func.func @transform_2(%arg0: i32) -> (i32, i32) {
    %c0_i32 = arith.constant 0 : i32
    %c0_i32_0 = arith.constant 0 : i32
    return %arg0, %c0_i32 : i32, i32
  }
}

</mosaic_0001>

<bundles_post_ra>
// kernel: tpu_custom_call.1
= control target key start
LH: loop header
LB: loop body
LE: loop exit
PB: predicated region body
PF: predicated region fallthrough
CT: control target
= control target key end

     0   :  { %7 = vsyncpa [#allocation3], 0  ;;  %s234_s0 = inlined_call_operand.hbm [shape: f32[16,32], index: 0, kind: input, shape index: {}]   ;;  %s235_s1 = inlined_call_operand.hbm [shape: f32[1,32], index: 1, kind: input, shape index: {}]   ;;  %s236_s2 = inlined_call_operand.hbm [shape: f32[16,32], index: 2, kind: output, shape index: {}]  }
   0x1   :  { %8 = vsyncpa [#allocation6], 0 }
   0x2   :  { %9 = vsyncpa [#allocation4], 0  ;;  %s14_s11 = sshll.u32 %s234_s0, 4  ;;  %s195_s12 = smov [#allocation2]   ;;  %s15_s11 = int_to_ptr.hbm [resolvable:$true] %s14_s11 }
   0x3   :  { %s16_s13 = sshll.u32 %s195_s12, 4  ;;  %s28_s16 = sshll.u32 %s235_s1, 4  ;;  %s17_s13 = int_to_ptr.vmem [resolvable:$true] %s16_s13  ;;  %s29_s16 = int_to_ptr.hbm [resolvable:$true] %s28_s16 }
   0x4   :  { %s196_s17 = smov 128   ;;  %s197_s18 = smov 8  }
   0x5   :  { %22 = dma.hbm_to_vmem [thread:$0]  %s15_s11, 256, %s17_s13, [#allocation3], %s196_s17, %s196_s17, %s197_s18  }
   0x6   :  { %s198_s19 = smov [#allocation5]  }
   0x7   :  { %s30_s20 = sshll.u32 %s198_s19, 4  ;;  %s31_s20 = int_to_ptr.vmem [resolvable:$true] %s30_s20 }
   0x8   :  { %33 = dma.hbm_to_vmem [thread:$0]  %s29_s16, 16, %s31_s20, [#allocation6]  }
   0x9   :  { %189 = dma.done.wait [#allocation3], 256  }
   0xa   :  { %190 = vsyncadd [#allocation3], 4294967040 }
   0xb   :  { %191 = dma.done.wait [#allocation6], 16  }
   0xc   :  { %192 = vsyncadd [#allocation6], 4294967280  ;;  %v42_v0 = vld [vmem:[#allocation2] sm:$0xff]  ;;  %vm46_vm0 = vcmask 261120   ;;  %v43_v2 = vld [vmem:[#allocation2 + $0x8] sm:$0xff]  ;;  %s199_s0 = smov [#allocation7]  }
   0xd   :  { %v44_v1 = vmul.f32 %v42_v0, %v42_v0  ;;  %v45_v4 = vmul.f32 %v43_v2, %v43_v2  ;;  %v112_v20 = vld [vmem:[#allocation5] ss:$0 sm:$0xff]  ;;  %s91_s1 = sshll.u32 %s199_s0, 4  ;;  %s93_s23 = sshll.u32 %s236_s2, 4  ;;  %s92_s1 = int_to_ptr.vmem [resolvable:$true] %s91_s1  ;;  %s94_s23 = int_to_ptr.hbm [resolvable:$true] %s93_s23 }
   0xf   :  { %v47_v3 = vsel %vm46_vm0, %v44_v1, 0.0  ;;  %v50_v5 = vsel %vm46_vm0, %v45_v4, 0.0 }
  0x10   :  { %48 = vadd.xlane.f32.xlu0 %v47_v3 }
  0x18   :  { %51 = vadd.xlane.f32.xlu0 %v50_v5 }
  0x83   :  { %v49_v6 = vpop.xlane.xlu0 %48 }
  0x84   :  { %v53_v7 = vmul.f32 0.03125, %v49_v6 }
  0x86   :  { %v55_v8 = vadd.f32 1e-06, %v53_v7 }
  0x88   :  { %113 = vrsqrt.f32 %v55_v8  ;;  %vm63_vm2 = vweird.f32 %v55_v8 }
  0x8b   :  { %v52_v9 = vpop.xlane.xlu0 %51 }
  0x8c   :  { %v54_v10 = vmul.f32 0.03125, %v52_v9 }
  0x8e   :  { %v114_v11 = vpop.eup %113  ;;  %v56_v12 = vadd.f32 1e-06, %v54_v10 }
  0x8f   :  { %v58_v13 = vmul.f32 %v114_v11, %v55_v8  ;;  %vm64_vm1 = vweird.f32 %v114_v11 }
  0x90   :  { %115 = vrsqrt.f32 %v56_v12  ;;  %vm65_vm3 = vmor %vm63_vm2, %vm64_vm1  ;;  %vm73_vm5 = vweird.f32 %v56_v12 }
  0x91   :  { %v59_v14 = vmul.f32 %v114_v11, %v58_v13 }
  0x93   :  { %v60_v15 = vmul.f32 0.5, %v59_v14 }
  0x95   :  { %v61_v16 = vsub.f32 1.5, %v60_v15 }
  0x96   :  { %v116_v17 = vpop.eup %115 }
  0x97   :  { %v62_v18 = vmul.f32 %v114_v11, %v61_v16  ;;  %v68_v19 = vmul.f32 %v116_v17, %v56_v12  ;;  %vm74_vm4 = vweird.f32 %v116_v17 }
  0x98   :  { %vm75_vm6 = vmor %vm73_vm5, %vm74_vm4 }
  0x99   :  { %v66_v21 = vsel %vm65_vm3, %v114_v11, %v62_v18  ;;  %v69_v22 = vmul.f32 %v116_v17, %v68_v19 }
  0x9a   :  { %v77_v23 = vmul.f32 %v66_v21, %v42_v0 }
  0x9b   :  { %v70_v24 = vmul.f32 0.5, %v69_v22 }
  0x9c   :  { %v83_v25 = vmul.f32 %v112_v20, %v77_v23 }
  0x9d   :  { %v71_v26 = vsub.f32 1.5, %v70_v24 }
  0x9e   :  { %85 = vst.msk [vmem:[#allocation7] sm:$0xff] %vm46_vm0, %v83_v25 }
  0x9f   :  { %v72_v27 = vmul.f32 %v116_v17, %v71_v26 }
  0xa1   :  { %v76_v28 = vsel %vm75_vm6, %v116_v17, %v72_v27 }
  0xa2   :  { %v78_v29 = vmul.f32 %v76_v28, %v43_v2 }
  0xa4   :  { %v84_v30 = vmul.f32 %v112_v20, %v78_v29 }
  0xa6   :  { %86 = vst.msk [vmem:[#allocation7 + $0x8] sm:$0xff] %vm46_vm0, %v84_v30 }
  0xa7   :  { %99 = dma.vmem_to_hbm [thread:$0]  %s92_s1, 256, %s94_s23, [#allocation4], %s196_s17, %s196_s17, %s197_s18  }
  0xa8   :  { %193 = dma.done.wait [#allocation4], 256  }
  0xa9   :  { %194 = vsyncadd [#allocation4], 4294967040 }
  0xaa   :  { %104 = vsyncpa [#allocation3], 1 }
  0xab   :  { %105 = vsyncpa [#allocation6], 1 }
  0xac   :  { %106 = vsyncpa [#allocation4], 1 }

</bundles_post_ra>
